<compile_context>
chip_gen: v7x
topology: tpu7x:2x2x1
jax: 0.10.0
libtpu: 0.0.40
codegen_flags: <defaults>
</compile_context>

<pallas_src>
import functools
import math

import jax
import jax.numpy as jnp
from jax.experimental import pallas as pl
from jax.experimental.pallas import tpu as pltpu


# ---------------------------------------------------------------------------
# Helpers
# ---------------------------------------------------------------------------

def _round_up(x, m):
    return ((x + m - 1) // m) * m


def _divisor_tile(dim, cap, step):
    """Largest multiple of `step` that divides `dim` and is <= max(cap, step).

    Assumes dim % step == 0.
    """
    t = (min(cap, dim) // step) * step
    while t > step and dim % t != 0:
        t -= step
    return max(t, step)


def _vmem_limit_bytes():
    """Per-generation scoped-VMEM limit, leaving headroom under physical VMEM."""
    cap = None
    try:
        info = pltpu.get_tpu_info()
        cap = getattr(info, "vmem_capacity_bytes", None)
    except Exception:
        cap = None
    if not cap:
        cap = 64 * 1024 * 1024  # conservative: v7x physical VMEM per TC
    return int(max(32 * 1024 * 1024, min(cap - cap // 4, 96 * 1024 * 1024)))


_SMALL_BYTES = 8 * 1024 * 1024  # below this footprint, single-block path


# ---------------------------------------------------------------------------
# Kernels
# ---------------------------------------------------------------------------

def _small_kernel(x_ref, w_ref, *refs, has_bias):
    # Whole problem in one block: (M,K) @ (K,Npad) [+ (1,Npad)]
    if has_bias:
        b_ref, o_ref = refs
    else:
        (o_ref,) = refs
    acc = jnp.dot(x_ref[...], w_ref[...], preferred_element_type=jnp.float32)
    if has_bias:
        acc = acc + b_ref[...]          # bias already f32
    o_ref[...] = acc.astype(o_ref.dtype)


def _tiled_kernel(x_ref, w_ref, *refs, has_bias, use_acc):
    # (M,N,K) grid, K innermost. If the output is f32 we accumulate directly
    # into the resident output block (no scratch); otherwise into an f32
    # VMEM accumulator and cast at the last K step.
    refs = list(refs)
    b_ref = refs.pop(0) if has_bias else None
    o_ref = refs.pop(0)
    acc_ref = refs.pop(0) if use_acc else o_ref

    k = pl.program_id(2)
    part = jnp.dot(x_ref[...], w_ref[...], preferred_element_type=jnp.float32)

    @pl.when(k == 0)
    def _():
        # Bias added exactly once, at init, in f32.
        acc_ref[...] = (part + b_ref[...]) if has_bias else part

    @pl.when(k != 0)
    def _():
        acc_ref[...] += part

    if use_acc:
        @pl.when(k == pl.num_programs(2) - 1)
        def _():
            o_ref[...] = acc_ref[...].astype(o_ref.dtype)


# ---------------------------------------------------------------------------
# Dispatch paths
# ---------------------------------------------------------------------------

def _linear_small(x2d, w, b, m, k, n_pad, out_dtype):
    has_bias = b is not None
    ci = jnp.dtype(w.dtype).itemsize
    oi = jnp.dtype(out_dtype).itemsize
    cost = pl.CostEstimate(
        flops=2 * m * k * n_pad,
        transcendentals=0,
        bytes_accessed=int(ci * (m * k + k * n_pad)
                           + (4 * n_pad if has_bias else 0)
                           + oi * m * n_pad),
    )
    operands = (x2d, w, b) if has_bias else (x2d, w)
    vmem_spec = pl.BlockSpec(memory_space=pltpu.MemorySpace.VMEM)
    return pl.pallas_call(
        functools.partial(_small_kernel, has_bias=has_bias),
        out_shape=jax.ShapeDtypeStruct((m, n_pad), out_dtype),
        in_specs=[vmem_spec] * len(operands),
        out_specs=vmem_spec,
        cost_estimate=cost,
    )(*operands)


def _linear_tiled(x2d, w, b, m, k, n_pad, out_dtype):
    has_bias = b is not None
    ci = jnp.dtype(w.dtype).itemsize
    oi = jnp.dtype(out_dtype).itemsize
    use_acc = jnp.dtype(out_dtype) != jnp.dtype(jnp.float32)

    # ---- tile selection ----------------------------------------------------
    sub = 16 if ci == 2 else 8                    # bf16 packs 2 rows / sublane
    tm = min(512, _round_up(m, sub))
    tn = _divisor_tile(n_pad, 512, 128)
    if k % 128 == 0:
        tk = _divisor_tile(k, 1024 if ci == 2 else 512, 128)
    else:
        tk = k                                    # one K step, full-K blocks (no x pad)

    # v7x megacore: keep the parallel (M/tm x N/tn) grid >= 2 blocks.
    while pl.cdiv(m, tm) * (n_pad // tn) < 2 and tn > 128:
        tn = _divisor_tile(n_pad, tn - 128, 128)

    gi, gj, gk = pl.cdiv(m, tm), n_pad // tn, k // tk
    grid = (gi, gj, gk)

    cost = pl.CostEstimate(
        flops=2 * m * k * n_pad,
        transcendentals=0,
        bytes_accessed=int(ci * m * k * gj             # A re-streamed per N tile
                           + ci * k * n_pad * gi       # B re-streamed per M tile
                           + (4 * n_pad * gi * gk if has_bias else 0)
                           + oi * m * n_pad),
    )

    in_specs = [
        pl.BlockSpec((tm, tk), lambda i, j, kk: (i, kk)),
        pl.BlockSpec((tk, tn), lambda i, j, kk: (kk, j)),
    ]
    operands = [x2d, w]
    if has_bias:
        in_specs.append(pl.BlockSpec((1, tn), lambda i, j, kk: (0, j)))
        operands.append(b)

    scratch_shapes = [pltpu.VMEM((tm, tn), jnp.float32)] if use_acc else []

    return pl.pallas_call(
        functools.partial(_tiled_kernel, has_bias=has_bias, use_acc=use_acc),
        out_shape=jax.ShapeDtypeStruct((m, n_pad), out_dtype),
        grid_spec=pltpu.PrefetchScalarGridSpec(
            num_scalar_prefetch=0,
            grid=grid,
            in_specs=in_specs,
            out_specs=pl.BlockSpec((tm, tn), lambda i, j, kk: (i, j)),
            scratch_shapes=scratch_shapes,
        ),
        compiler_params=pltpu.CompilerParams(
            dimension_semantics=("parallel", "parallel", "arbitrary"),
            vmem_limit_bytes=_vmem_limit_bytes(),
        ),
        cost_estimate=cost,
    )(*operands)


# ---------------------------------------------------------------------------
# Public init + forward
# ---------------------------------------------------------------------------

def init_linear_params(key, input_dim, output_dim, bias=True,
                       param_dtype=jnp.float32, compute_dtype=jnp.bfloat16):
    """Xavier-uniform weight (as torch init.xavier_uniform_), zero bias.

    The weight is prepared for the kernel ONCE here: stored pre-transposed as
    (input_dim, output_dim), cast to `compute_dtype` (default bf16 for the
    MXU; kernel accumulation stays f32) and padded along the output dim to a
    multiple of 128 for lane-dense stores.  compute_dtype=None keeps f32.
    Xavier bound is symmetric in fan_in/fan_out so the transposed init is
    distribution-identical to the PyTorch module.
    """
    bound = math.sqrt(6.0 / (input_dim + output_dim))
    w = jax.random.uniform(key, (input_dim, output_dim), dtype=param_dtype,
                           minval=-bound, maxval=bound)
    store_dtype = param_dtype if compute_dtype is None else compute_dtype
    n_pad = _round_up(output_dim, 128)
    w_prep = w.astype(store_dtype)
    if n_pad != output_dim:
        w_prep = jnp.pad(w_prep, ((0, 0), (0, n_pad - output_dim)))
    b_prep = jnp.zeros((1, n_pad), dtype=jnp.float32) if bias else None
    return {"weight": w_prep, "bias": b_prep, "out_dim": output_dim}


def linear_forward(x, params, *, force_path=None):
    """nn.Linear forward: y = x @ W^T + b, applied over the last axis of x."""
    w = params["weight"]        # (in_dim, n_pad), compute dtype, pre-transposed/padded
    b = params["bias"]          # (1, n_pad) f32 or None
    out_dim = params["out_dim"]
    in_dim, n_pad = w.shape
    if x.shape[-1] != in_dim:
        raise ValueError(f"expected last dim {in_dim}, got {x.shape[-1]}")

    lead = x.shape[:-1]
    m = math.prod(lead) if lead else 1
    out_dtype = x.dtype

    x2d = x.reshape(m, in_dim)
    if x2d.dtype != w.dtype:
        x2d = x2d.astype(w.dtype)       # cast activations to MXU compute dtype

    ci = jnp.dtype(w.dtype).itemsize
    oi = jnp.dtype(out_dtype).itemsize
    total_bytes = ci * (m * in_dim + in_dim * n_pad) + oi * m * n_pad

    path = force_path or ("small" if total_bytes <= _SMALL_BYTES else "tiled")
    if path == "small":
        out2d = _linear_small(x2d, w, b, m, in_dim, n_pad, out_dtype)
    else:
        out2d = _linear_tiled(x2d, w, b, m, in_dim, n_pad, out_dtype)

    if n_pad != out_dim:
        out2d = out2d[:, :out_dim]
    return out2d.reshape(*lead, out_dim)


# ---------------------------------------------------------------------------
# Demo / self-check
# ---------------------------------------------------------------------------

if __name__ == "__main__":
    key = jax.random.PRNGKey(0)
    k1, k2, k3, k4, k5, k6 = jax.random.split(key, 6)

    # 1) Small single-block path, default bf16 compute.
    batch, seq, in_dim, out_dim = 2, 8, 32, 64
    params = init_linear_params(k1, in_dim, out_dim, bias=True)
    x = jax.random.normal(k2, (batch, seq, in_dim), dtype=jnp.float32)
    y = jax.block_until_ready(linear_forward(x, params))
    w_f32 = params["weight"].astype(jnp.float32)[:, :out_dim]
    x_q = x.astype(jnp.bfloat16).astype(jnp.float32)
    ref = jnp.einsum("bsk,kn->bsn", x_q, w_f32,
                     precision=jax.lax.Precision.HIGHEST) + params["bias"][0, :out_dim]
    assert y.shape == (batch, seq, out_dim)
    assert jnp.allclose(y, ref, atol=2e-2, rtol=2e-2), "small-path (bf16) mismatch"

    # 2) Tiled (M,N,K) grid path: K-split accumulation, partial-M boundary
    #    block, N-tile shrink for the megacore parallel grid.
    b2, s2, in2, out2 = 2, 190, 1536, 384
    params2 = init_linear_params(k3, in2, out2, bias=True)
    x2 = jax.random.normal(k4, (b2, s2, in2), dtype=jnp.float32)
    y2 = jax.block_until_ready(linear_forward(x2, params2, force_path="tiled"))
    w2_f32 = params2["weight"].astype(jnp.float32)[:, :out2]
    x2_q = x2.astype(jnp.bfloat16).astype(jnp.float32)
    ref2 = jnp.einsum("bsk,kn->bsn", x2_q, w2_f32,
                      precision=jax.lax.Precision.HIGHEST) + params2["bias"][0, :out2]
    assert y2.shape == (b2, s2, out2)
    assert jnp.allclose(y2, ref2, atol=3e-2, rtol=3e-2), "tiled-path (bf16) mismatch"

    # 3) f32 escape hatch, no bias, 2-D input.
    params3 = init_linear_params(k5, 48, 96, bias=False, compute_dtype=None)
    x3 = jax.random.normal(k6, (4, 48), dtype=jnp.float32)
    y3 = jax.block_until_ready(linear_forward(x3, params3))
    ref3 = jnp.dot(x3, params3["weight"][:, :96],
                   precision=jax.lax.Precision.HIGHEST)
    assert y3.shape == (4, 96)
    assert jnp.allclose(y3, ref3, atol=1e-3, rtol=1e-3), "f32 small-path mismatch"

    print("KERNEL_OK")
</pallas_src>

<mosaic_0001>
module attributes {stable_mosaic.version = 11 : i64} {
  func.func @_small_kernel(%arg0: memref<16x32xbf16, #tpu.memory_space<vmem>>, %arg1: memref<32x128xbf16, #tpu.memory_space<vmem>>, %arg2: memref<1x128xf32, #tpu.memory_space<vmem>>, %arg3: memref<16x128xf32, #tpu.memory_space<vmem>>) attributes {dimension_semantics = [], scalar_prefetch = 0 : i64, scratch_operands = 0 : i64, tpu.core_type = #tpu.core_type<tc>} {
    %c0 = arith.constant 0 : index
    %c0_0 = arith.constant 0 : index
    %0 = vector.load %arg0[%c0, %c0_0] : memref<16x32xbf16, #tpu.memory_space<vmem>>, vector<16x32xbf16>
    %c0_1 = arith.constant 0 : index
    %c0_2 = arith.constant 0 : index
    %1 = vector.load %arg1[%c0_1, %c0_2] : memref<32x128xbf16, #tpu.memory_space<vmem>>, vector<32x128xbf16>
    %cst = arith.constant dense<0.000000e+00> : vector<16x128xf32>
    %2 = tpu.matmul %0, %1, %cst {dimension_numbers = #tpu.dot_dimension_numbers<[1], [0], [0], [1], [0, 0, 1, 1], [], []>} : vector<16x32xbf16>, vector<32x128xbf16>, vector<16x128xf32> -> vector<16x128xf32>
    %c0_3 = arith.constant 0 : index
    %c0_4 = arith.constant 0 : index
    %3 = vector.load %arg2[%c0_3, %c0_4] : memref<1x128xf32, #tpu.memory_space<vmem>>, vector<1x128xf32>
    %4 = vector.broadcast %3 : vector<1x128xf32> to vector<16x128xf32>
    %5 = arith.addf %2, %4 : vector<16x128xf32>
    %c0_5 = arith.constant 0 : index
    %c0_6 = arith.constant 0 : index
    %6 = vector.load %arg3[%c0_5, %c0_6] : memref<16x128xf32, #tpu.memory_space<vmem>>, vector<16x128xf32>
    tpu.vector_store %arg3[%c0_5, %c0_6], %5 {strides = array<i32>} : memref<16x128xf32, #tpu.memory_space<vmem>>, vector<16x128xf32>,
    return
  }
}

</mosaic_0001>

<bundles_post_ra>
// kernel: tpu_custom_call.1
= control target key start
LH: loop header
LB: loop body
LE: loop exit
PB: predicated region body
PF: predicated region fallthrough
CT: control target
= control target key end

     0   :  { %8 = vsyncpa [#allocation3], 0  ;;  %s307_s0 = inlined_call_operand.hbm [shape: bf16[16,32], index: 0, kind: input, shape index: {}]   ;;  %s308_s1 = inlined_call_operand.hbm [shape: bf16[32,128], index: 1, kind: input, shape index: {}]   ;;  %s309_s2 = inlined_call_operand.vmem [shape: f32[1,128], index: 2, kind: input, shape index: {}]   ;;  %s310_s3 = inlined_call_operand.hbm [shape: f32[16,128], index: 3, kind: output, shape index: {}]  }
   0x1   :  { %9 = vsyncpa [#allocation6], 0 }
   0x2   :  { %10 = vsyncpa [#allocation4], 0  ;;  %s239_s12 = smov [#allocation2]   ;;  %s167_s16 = scalar_lea.hbm %s307_s0, 128 }
   0x3   :  { %s16_s13 = sshll.u32 %s239_s12, 4  ;;  %p168_p0 = scmp.ne.s32.totalorder %s307_s0, %s167_s16  ;;  %s17_s13 = int_to_ptr.vmem [resolvable:$true] %s16_s13 }
   0x4   :  { %p171_p1 = scmp.lt.u32.totalorder %s167_s16, %s307_s0 }
   0x6   :  { %p173_p2 = pnand %p171_p1, %p168_p0 }
   0x8   :  { %176 = shalt.err (!%p173_p2)
}
   0x9   :  { %s177_s21 = scalar_lea.vmem %s17_s13, 128  ;;  %p182_p4 = scmp.lt.s32.totalorder %s17_s13, %s17_s13 }
   0xa   :  { %p178_p3 = scmp.ne.s32.totalorder %s17_s13, %s177_s21  ;;  %p183_p5 = scmp.lt.s32.totalorder %s177_s21, %s177_s21 }
   0xc   :  { %p184_p6 = por %p183_p5, %p182_p4 }
   0xe   :  { %p185_p7 = pnand %p184_p6, %p178_p3 }
  0x10   :  { %188 = shalt.err (!%p185_p7)
}
  0x11   :  { %s240_s22 = smov 64   ;;  %s241_s23 = smov 4  }
  0x12   :  { %22 = dma.hbm_to_vmem [thread:$0]  %s307_s0, 128, %s17_s13, [#allocation3], %s240_s22, %s240_s22, %s241_s23  }
  0x13   :  { %s242_s26 = smov [#allocation5]   ;;  %s189_s30 = scalar_lea.hbm %s308_s1, 256 }
  0x14   :  { %s28_s27 = sshll.u32 %s242_s26, 4  ;;  %p190_p8 = scmp.ne.s32.totalorder %s308_s1, %s189_s30  ;;  %s29_s27 = int_to_ptr.vmem [resolvable:$true] %s28_s27 }
  0x15   :  { %p193_p9 = scmp.lt.u32.totalorder %s189_s30, %s308_s1 }
  0x17   :  { %p195_p10 = pnand %p193_p9, %p190_p8 }
  0x19   :  { %198 = shalt.err (!%p195_p10)
}
  0x1a   :  { %s199_s8 = scalar_lea.vmem %s29_s27, 256  ;;  %p204_p12 = scmp.lt.s32.totalorder %s29_s27, %s29_s27 }
  0x1b   :  { %p200_p11 = scmp.ne.s32.totalorder %s29_s27, %s199_s8  ;;  %p205_p13 = scmp.lt.s32.totalorder %s199_s8, %s199_s8 }
  0x1d   :  { %p206_p0 = por %p205_p13, %p204_p12 }
  0x1f   :  { %p207_p1 = pnand %p206_p0, %p200_p11 }
  0x21   :  { %210 = shalt.err (!%p207_p1)
}
  0x22   :  { %34 = dma.hbm_to_vmem [thread:$0]  %s308_s1, 256, %s29_s27, [#allocation6], %s240_s22, %s240_s22, %s241_s23  }
  0x23   :  { %233 = dma.done.wait [#allocation3], 128  }
  0x24   :  { %234 = vsyncadd [#allocation3], 4294967168 }
  0x25   :  { %235 = dma.done.wait [#allocation6], 256  }
  0x26   :  { %236 = vsyncadd [#allocation6], 4294967040  ;;  %v243_v0 = vmov 0.0   ;;  %vm244_vm0 = vmmov 0   ;;  %v164_v1 = vld [vmem:[#allocation5] sm:$0xff]   ;;  %v165_v2 = vld [vmem:[#allocation5 + $0x8] sm:$0xff]  }
  0x27   :  { %147 = vmatprep.subr.bf16.mxu0 %v243_v0  ;;  %151 = vmatprep.mubr.msk.bf16.mxu0 %vm244_vm0, %v243_v0  ;;  %v166_v3 = vld [vmem:[#allocation2] sm:$0xff]   ;;  %vm74_vm1 = vcmask 261120   ;;  %s245_s1 = smov [#allocation7]  }
  0x28   :  { %148 = vmatpush3.bf16.msra.mxu0 %v164_v1  ;;  %v139_v4 = vld [vmem:[%s309_s2] ss:$0 sm:$0xff]  ;;  %s126_s12 = sshll.u32 %s245_s1, 4  ;;  %s127_s12 = int_to_ptr.vmem [resolvable:$true] %s126_s12 }
  0x29   :  { %149 = vmatprep.subr.bf16.mxu0 %v243_v0  ;;  %s211_s13 = scalar_lea.vmem %s127_s12, 256  ;;  %p216_p3 = scmp.lt.s32.totalorder %s127_s12, %s127_s12 }
  0x2a   :  { %p212_p2 = scmp.ne.s32.totalorder %s127_s12, %s211_s13  ;;  %p217_p4 = scmp.lt.s32.totalorder %s211_s13, %s211_s13 }
  0x2c   :  { %150 = vmatpush3.bf16.msra.mxu0 %v165_v2  ;;  %p218_p5 = por %p217_p4, %p216_p3 }
  0x2e   :  { %p219_p6 = pnand %p218_p5, %p212_p2 }
  0x2f   :  { %152 = vmatmul.mubr.msk.bf16.vlgmr.msra.gmra.mrb[0].mxu0 %vm74_vm1, %v166_v3 }
 0x102   :  { %v112_v5 = vpop.f32.mrb[0].mxu0 }
 0x103   :  { %v113_v6 = vadd.f32 %v139_v4, %v112_v5  ;;  %v153_v7 = vpop.f32.mrb[1].mxu0 }
 0x104   :  { %v115_v8 = vpop.f32.mrb[2].mxu0 }
 0x105   :  { %119 = vst [vmem:[#allocation7] sm:$0xff] %v113_v6  ;;  %v116_v9 = vadd.f32 %v139_v4, %v115_v8  ;;  %v154_v10 = vpop.f32.mrb[3].mxu0 }
 0x107   :  { %120 = vst [vmem:[#allocation7 + $0x8] sm:$0xff] %v116_v9 }
 0x108   :  { %222 = shalt.err (!%p219_p6)
}
 0x109   :  { %s223_s15 = scalar_lea.hbm %s310_s3, 256 }
 0x10a   :  { %p224_p7 = scmp.ne.s32.totalorder %s310_s3, %s223_s15  ;;  %p227_p8 = scmp.lt.u32.totalorder %s223_s15, %s310_s3 }
 0x10c   :  { %p229_p9 = pnand %p227_p8, %p224_p7 }
 0x10e   :  { %232 = shalt.err (!%p229_p9)
}
 0x10f   :  { %s246_s20 = smov 128   ;;  %s247_s21 = smov 8  }
 0x110   :  { %132 = dma.vmem_to_hbm [thread:$0]  %s127_s12, 256, %s310_s3, [#allocation4], %s246_s20, %s246_s20, %s247_s21  }
 0x111   :  { %237 = dma.done.wait [#allocation4], 256  }
 0x112   :  { %238 = vsyncadd [#allocation4], 4294967040 }
 0x113   :  { %136 = vsyncpa [#allocation3], 1 }
 0x114   :  { %137 = vsyncpa [#allocation6], 1 }
 0x115   :  { %138 = vsyncpa [#allocation4], 1 }

</bundles_post_ra>
